<compile_context>
chip_gen: v7x
topology: tpu7x:2x2x1
jax: 0.10.0
libtpu: 0.0.40
codegen_flags: <defaults>
</compile_context>

<pallas_src>
import numpy as np
import jax
import jax.numpy as jnp
from jax import lax
from jax.experimental import pallas as pl
from jax.experimental.pallas import tpu as pltpu

POOL = 20   # AdaptiveAvgPool2d target extent in the module
PP = 32     # POOL padded to a lane-friendly width


# ----------------------------------------------------------------------------
# Host-side structural-matrix builders (exact PyTorch semantics)
# ----------------------------------------------------------------------------
def adaptive_pool_matrix(in_size, out_size):
    """P[i, r]: weight of input index r in adaptive-avg-pool output bin i."""
    P = np.zeros((out_size, in_size), dtype=np.float64)
    for i in range(out_size):
        start = (i * in_size) // out_size
        end = -((-(i + 1) * in_size) // out_size)          # ceil((i+1)*in/out)
        P[i, start:end] = 1.0 / (end - start)
    return P


def bilinear_matrix(in_size, out_size):
    """M[d, s]: bilinear (align_corners=False) weights, out[d] = sum_s M[d,s]*in[s]."""
    M = np.zeros((out_size, in_size), dtype=np.float64)
    scale = in_size / out_size
    for d in range(out_size):
        src = max((d + 0.5) * scale - 0.5, 0.0)
        i0 = int(np.floor(src))
        i1 = min(i0 + 1, in_size - 1)
        l1 = src - i0
        M[d, i0] += 1.0 - l1
        M[d, i1] += l1
    return M


def shift_matrices(n):
    """S_k (k=0,1,2) with (p @ S_k)[:, i] = p[:, i + k - 1], zero padded."""
    s_minus = np.zeros((n, n), dtype=np.float64)
    s_plus = np.zeros((n, n), dtype=np.float64)
    for i in range(n):
        if i - 1 >= 0:
            s_minus[i - 1, i] = 1.0
        if i + 1 < n:
            s_plus[i + 1, i] = 1.0
    return s_minus, np.eye(n, dtype=np.float64), s_plus


def _build_operands(w1, w2, bn1, bn2, H, W, eps):
    """Fold BN + mean/pool/shift/upsample/broadcast into a few small matrices."""
    w1 = np.asarray(w1, np.float64)
    w2 = np.asarray(w2, np.float64)
    C = w1.shape[0]
    HW = H * W

    g1, be1, mu1, v1 = (np.asarray(a, np.float64) for a in bn1)
    g2, be2, mu2, v2 = (np.asarray(a, np.float64) for a in bn2)
    # TODO(synk): BatchNorm is folded with running stats (eval mode); training-mode
    # batch statistics are not reproduced.
    sc1 = g1 / np.sqrt(v1 + eps)
    sc2 = g2 / np.sqrt(v2 + eps)
    w1f = w1 * sc1[:, None, None]          # (C, C, 3): BN scale folded into the taps
    w2f = w2 * sc2[:, None, None]
    bias1 = be1 - mu1 * sc1                # (C,): BN shift
    bias2 = be2 - mu2 * sc2

    # mean over the non-pooled axis + adaptive pool, as (H*W, POOL) matrices
    Ph = adaptive_pool_matrix(H, POOL)     # (POOL, H)
    Pw = adaptive_pool_matrix(W, POOL)     # (POOL, W)
    Qh = np.repeat(Ph.T, W, axis=0) / W    # (H*W, POOL): pool1 = xf @ Qh
    Qw = np.tile(Pw.T, (H, 1)) / H         # (H*W, POOL): pool2 = xf @ Qw

    # conv taps (k=0,1,2 <-> input offsets -1,0,+1) folded in as column shifts;
    # branch-1 taps occupy lane groups 0..2, branch-2 taps lane groups 3..5.
    q_all = np.zeros((HW, 6 * PP))
    for k, S in enumerate(shift_matrices(POOL)):
        q_all[:, k * PP:k * PP + POOL] = Qh @ S
        q_all[:, (3 + k) * PP:(3 + k) * PP + POOL] = Qw @ S

    # per-tap channel-mix weights, tap-major (3, C, C) — batch-block independent
    w1t = np.transpose(w1f, (2, 0, 1))
    w2t = np.transpose(w2f, (2, 0, 1))

    # BN shifts pre-broadcast across the PP lanes (no 1-lane operands)
    b1 = np.tile(bias1[:, None], (1, PP))  # (C, PP)
    b2 = np.tile(bias2[:, None], (1, PP))

    # bilinear 20->H / 20->W upsample fused with the a[h] + b[w] broadcast;
    # rows POOL..PP-1 are zero, so the bias padding lanes in z never contribute.
    Mh = bilinear_matrix(POOL, H)          # (H, POOL)
    Mw = bilinear_matrix(POOL, W)          # (W, POOL)
    mh_full = np.zeros((PP, HW))
    mh_full[:POOL, :] = np.repeat(Mh.T, W, axis=1)      # branch 1: const along W
    mw_full = np.zeros((PP, HW))
    mw_full[:POOL, :] = np.tile(Mw.T, (1, H))           # branch 2: const along H

    f32 = lambda a: jnp.asarray(a, jnp.float32)
    bf16 = lambda a: jnp.asarray(a, jnp.bfloat16)
    # q_all rides the bf16 MXU fast path against the bf16 x block; the tiny
    # channel-mix / upsample operands stay f32.
    return (bf16(q_all), f32(w1t), f32(w2t), f32(b1), f32(b2),
            f32(mh_full), f32(mw_full))


# ----------------------------------------------------------------------------
# Pallas kernel: one (C, H*W) lane-dense block (= one batch element) per step
# ----------------------------------------------------------------------------
def h3_kernel(x_ref, q_ref, w1_ref, w2_ref, b1_ref, b2_ref, mh_ref, mw_ref, o_ref):
    pp = b1_ref.shape[1]
    xf = x_ref[...]                                                     # (C, H*W) bf16

    # (1) mean + adaptive pool + conv-tap shifts, both branches: ONE bf16 MXU
    #     matmul with f32 accumulation (K = H*W rides the MXU for free).
    #     (If tighter accuracy is ever needed, add precision=lax.Precision.HIGHEST
    #     here only — this is the long-K contraction; kernel stays HBM-bound.)
    pools = jnp.dot(xf, q_ref[...], preferred_element_type=jnp.float32)  # (C, 6*pp)

    # (2) per-tap channel mix; BN scale is folded into the taps and the BN shift
    #     is the accumulator init.  Six tiny accumulating matmuls — no
    #     block-diagonal weights, no axis-0 concatenate.
    z1 = b1_ref[...]
    z2 = b2_ref[...]
    for k in range(3):                                   # static, 3 conv taps
        z1 = z1 + jnp.dot(w1_ref[k], pools[:, k * pp:(k + 1) * pp],
                          preferred_element_type=jnp.float32)
        z2 = z2 + jnp.dot(w2_ref[k], pools[:, (3 + k) * pp:(4 + k) * pp],
                          preferred_element_type=jnp.float32)

    # (3) bilinear upsample + (a[h] + b[w]) broadcast as two accumulating matmuls
    #     into a lane-dense (C, H*W) slab (no 32-lane-offset concatenate).
    add = (jnp.dot(z1, mh_ref[...], preferred_element_type=jnp.float32)
           + jnp.dot(z2, mw_ref[...], preferred_element_type=jnp.float32))

    # elementwise hot path; bf16 store halves the HBM write traffic
    o_ref[...] = (xf.astype(jnp.float32) * add).astype(o_ref.dtype)


def h3_forward(x, w1, w2, bn1, bn2, *, eps=1e-5):
    """H3_Module.forward.

    x: (N, C, H, W); w*: (C, C, 3) conv taps; bn* = (gamma, beta, mean, var).
    Returns bf16 (N, C, H, W) — the kernel reads and writes x in bf16 so the
    mem-bound pass over x costs half the HBM bytes of f32 I/O.
    """
    N, C, H, W = x.shape
    HW = H * W
    # Lane-density note: blocks are legal for any H, W (they span the full array
    # dims), but stores are unmasked/full-lane only when H*W % 128 == 0.
    # TODO(synk): pad the flattened H*W axis to a multiple of 128 for general
    # feature-map sizes to keep the epilogue stores unmasked.

    consts = _build_operands(w1, w2, bn1, bn2, H, W, eps)
    q_all, w1t, w2t, b1, b2, mh_full, mw_full = consts

    x3 = jnp.asarray(x, jnp.bfloat16).reshape(N, C, HW)   # free view of NCHW

    # Per-generation VMEM budget from the actual buffers (x/out double-buffered
    # bf16 blocks + constants + f32 elementwise temporaries), capped at 3/4 of
    # physical VMEM (v7x TensorCores only have 64 MiB total).
    const_bytes = sum(int(a.size) * a.dtype.itemsize for a in consts)
    block_bytes = C * HW * 2                        # one bf16 x/out block
    work_bytes = 3 * C * HW * 4 + 10 * C * PP * 4 + 6 * C * PP * 4
    need = 4 * block_bytes + 2 * const_bytes + work_bytes + (8 << 20)
    try:
        cap = int(pltpu.get_tpu_info().vmem_capacity_bytes)
    except Exception:
        cap = 64 << 20                              # conservative (v7x per-TC VMEM)
    vmem_limit = int(min(max(need, 32 << 20), (3 * cap) // 4))

    def build(single_buffer_consts):
        def cspec(shape):
            index_map = lambda n: (0,) * len(shape)
            if single_buffer_consts:
                # Constant operands are DMA'd once; don't pay for a dead second
                # VMEM buffer.
                return pl.BlockSpec(shape, index_map, pipeline_mode=pl.Buffered(1))
            return pl.BlockSpec(shape, index_map)

        grid_spec = pltpu.PrefetchScalarGridSpec(
            num_scalar_prefetch=0,
            grid=(N,),                               # >= 2 steps: megacore + pipeline
            in_specs=[
                pl.BlockSpec((None, C, HW), lambda n: (n, 0, 0)),  # x (bf16, lane-dense)
                cspec((HW, 6 * PP)),    # pooling + tap-shift matrix (bf16)
                cspec((3, C, C)),       # conv1 taps (BN1 scale folded), f32
                cspec((3, C, C)),       # conv2 taps (BN2 scale folded), f32
                cspec((C, PP)),         # BN1 shift (lane-broadcast)
                cspec((C, PP)),         # BN2 shift
                cspec((PP, HW)),        # bilinear-H upsample + broadcast over W
                cspec((PP, HW)),        # bilinear-W upsample + broadcast over H
            ],
            out_specs=pl.BlockSpec((None, C, HW), lambda n: (n, 0, 0)),
        )
        return pl.pallas_call(
            h3_kernel,
            out_shape=jax.ShapeDtypeStruct((N, C, HW), jnp.bfloat16),
            grid_spec=grid_spec,
            compiler_params=pltpu.CompilerParams(
                dimension_semantics=("parallel",),   # batch blocks are independent
                vmem_limit_bytes=vmem_limit,
            ),
        )

    try:
        out = build(True)(x3, *consts)
    except Exception:
        # Installed Pallas without BlockSpec.pipeline_mode / Buffered(1):
        # fall back to default double-buffering for the constants.
        out = build(False)(x3, *consts)
    return out.reshape(N, C, H, W)


# ----------------------------------------------------------------------------
# Plain-JAX reference (mirrors the PyTorch ops directly, for self-check)
# ----------------------------------------------------------------------------
def h3_reference(x, w1, w2, bn1, bn2, *, eps=1e-5):
    N, C, H, W = x.shape
    hi = lax.Precision.HIGHEST
    Ph = jnp.asarray(adaptive_pool_matrix(H, POOL), jnp.float32)   # (POOL, H)
    Pw = jnp.asarray(adaptive_pool_matrix(W, POOL), jnp.float32)   # (POOL, W)
    Mh = jnp.asarray(bilinear_matrix(POOL, H), jnp.float32)        # (H, POOL)
    Mw = jnp.asarray(bilinear_matrix(POOL, W), jnp.float32)        # (W, POOL)

    p1 = jnp.einsum('nchw,th->nct', x, Ph, precision=hi) / W       # pool1 (20,1)
    p2 = jnp.einsum('nchw,tw->nct', x, Pw, precision=hi) / H       # pool2 (1,20)

    def conv3(p, w):       # size-3 conv, zero pad, along the POOL axis
        pm = jnp.pad(p, ((0, 0), (0, 0), (1, 0)))[:, :, :POOL]
        pp_ = jnp.pad(p, ((0, 0), (0, 0), (0, 1)))[:, :, 1:]
        return (jnp.einsum('oc,nct->not', w[:, :, 0], pm, precision=hi)
                + jnp.einsum('oc,nct->not', w[:, :, 1], p, precision=hi)
                + jnp.einsum('oc,nct->not', w[:, :, 2], pp_, precision=hi))

    def bn(y, prm):
        g, b, mu, v = prm
        s = g / jnp.sqrt(v + eps)
        return y * s[None, :, None] + (b - mu * s)[None, :, None]

    z1 = bn(conv3(p1, w1), bn1)
    z2 = bn(conv3(p2, w2), bn2)
    a = jnp.einsum('nct,ht->nch', z1, Mh, precision=hi)
    b = jnp.einsum('nct,wt->ncw', z2, Mw, precision=hi)
    return x * (a[:, :, :, None] + b[:, :, None, :])


if __name__ == "__main__":
    N, C, H, W = 2, 8, 16, 16          # inplanes == outplanes == C
    eps = 1e-5

    key = jax.random.PRNGKey(0)
    keys = jax.random.split(key, 11)
    x = jax.random.normal(keys[0], (N, C, H, W), dtype=jnp.float32)

    # Conv weights: (C_out, C_in, 3) — the length-3 tap axis of the (3,1)/(1,3) kernels.
    w1 = 0.1 * jax.random.normal(keys[1], (C, C, 3), dtype=jnp.float32)
    w2 = 0.1 * jax.random.normal(keys[2], (C, C, 3), dtype=jnp.float32)

    # BatchNorm2d params (gamma, beta, running_mean, running_var) — eval mode.
    bn1 = (0.5 + jax.random.uniform(keys[3], (C,), dtype=jnp.float32),
           0.1 * jax.random.normal(keys[4], (C,), dtype=jnp.float32),
           0.1 * jax.random.normal(keys[5], (C,), dtype=jnp.float32),
           0.5 + jax.random.uniform(keys[6], (C,), dtype=jnp.float32))
    bn2 = (0.5 + jax.random.uniform(keys[7], (C,), dtype=jnp.float32),
           0.1 * jax.random.normal(keys[8], (C,), dtype=jnp.float32),
           0.1 * jax.random.normal(keys[9], (C,), dtype=jnp.float32),
           0.5 + jax.random.uniform(keys[10], (C,), dtype=jnp.float32))

    # The kernel reads x in bf16; run the reference on the same bf16-quantized x
    # so the check isolates kernel math from input quantization.  The kernel's
    # bf16 output and default-precision MXU matmuls account for the tolerance.
    x_q = x.astype(jnp.bfloat16).astype(jnp.float32)
    ref = jax.block_until_ready(h3_reference(x_q, w1, w2, bn1, bn2, eps=eps))

    out = jax.block_until_ready(h3_forward(x, w1, w2, bn1, bn2, eps=eps))
    np.testing.assert_allclose(np.asarray(out.astype(jnp.float32)),
                               np.asarray(ref), rtol=2e-2, atol=2e-2)

    print("KERNEL_OK")
</pallas_src>

<mosaic_0001>
module attributes {stable_mosaic.version = 11 : i64} {
  func.func @h3_kernel(%arg0: i32, %arg1: memref<1x8x256xbf16, #tpu.memory_space<vmem>>, %arg2: memref<256x192xbf16, #tpu.memory_space<vmem>>, %arg3: memref<3x8x8xf32, #tpu.memory_space<vmem>>, %arg4: memref<3x8x8xf32, #tpu.memory_space<vmem>>, %arg5: memref<8x32xf32, #tpu.memory_space<vmem>>, %arg6: memref<8x32xf32, #tpu.memory_space<vmem>>, %arg7: memref<32x256xf32, #tpu.memory_space<vmem>>, %arg8: memref<32x256xf32, #tpu.memory_space<vmem>>, %arg9: memref<1x8x256xbf16, #tpu.memory_space<vmem>>) attributes {dimension_semantics = [#tpu.dimension_semantics<parallel>], iteration_bounds = array<i64: 2>, scalar_prefetch = 0 : i64, scratch_operands = 0 : i64, tpu.core_type = #tpu.core_type<tc>, window_params = [{transform_indices = @transform_0, window_bounds = array<i64: 1, 8, 256>}, {pipeline_mode = #tpu.pipeline_mode<synchronous>, transform_indices = @transform_1, window_bounds = array<i64: 256, 192>}, {pipeline_mode = #tpu.pipeline_mode<synchronous>, transform_indices = @transform_2, window_bounds = array<i64: 3, 8, 8>}, {pipeline_mode = #tpu.pipeline_mode<synchronous>, transform_indices = @transform_3, window_bounds = array<i64: 3, 8, 8>}, {pipeline_mode = #tpu.pipeline_mode<synchronous>, transform_indices = @transform_4, window_bounds = array<i64: 8, 32>}, {pipeline_mode = #tpu.pipeline_mode<synchronous>, transform_indices = @transform_5, window_bounds = array<i64: 8, 32>}, {pipeline_mode = #tpu.pipeline_mode<synchronous>, transform_indices = @transform_6, window_bounds = array<i64: 32, 256>}, {pipeline_mode = #tpu.pipeline_mode<synchronous>, transform_indices = @transform_7, window_bounds = array<i64: 32, 256>}, {transform_indices = @transform_8, window_bounds = array<i64: 1, 8, 256>}]} {
    %c0 = arith.constant 0 : index
    %c0_0 = arith.constant 0 : index
    %c0_1 = arith.constant 0 : index
    %0 = vector.load %arg1[%c0, %c0_0, %c0_1] : memref<1x8x256xbf16, #tpu.memory_space<vmem>>, vector<1x8x256xbf16>
    %1 = vector.shape_cast %0 : vector<1x8x256xbf16> to vector<8x256xbf16>
    %c0_2 = arith.constant 0 : index
    %c0_3 = arith.constant 0 : index
    %2 = vector.load %arg2[%c0_2, %c0_3] : memref<256x192xbf16, #tpu.memory_space<vmem>>, vector<256x192xbf16>
    %cst = arith.constant dense<0.000000e+00> : vector<8x192xf32>
    %3 = tpu.matmul %1, %2, %cst {dimension_numbers = #tpu.dot_dimension_numbers<[1], [0], [0], [1], [0, 0, 1, 1], [], []>} : vector<8x256xbf16>, vector<256x192xbf16>, vector<8x192xf32> -> vector<8x192xf32>
    %c0_4 = arith.constant 0 : index
    %c0_5 = arith.constant 0 : index
    %4 = vector.load %arg5[%c0_4, %c0_5] : memref<8x32xf32, #tpu.memory_space<vmem>>, vector<8x32xf32>
    %c0_6 = arith.constant 0 : index
    %c0_7 = arith.constant 0 : index
    %5 = vector.load %arg6[%c0_6, %c0_7] : memref<8x32xf32, #tpu.memory_space<vmem>>, vector<8x32xf32>
    %c0_8 = arith.constant 0 : index
    %c0_9 = arith.constant 0 : index
    %c0_10 = arith.constant 0 : index
    %6 = vector.load %arg3[%c0_8, %c0_9, %c0_10] : memref<3x8x8xf32, #tpu.memory_space<vmem>>, vector<1x8x8xf32>
    %7 = vector.shape_cast %6 : vector<1x8x8xf32> to vector<8x8xf32>
    %8 = vector.extract_strided_slice %3 {offsets = [0, 0], sizes = [8, 32], strides = [1, 1]} : vector<8x192xf32> to vector<8x32xf32>
    %cst_11 = arith.constant dense<0.000000e+00> : vector<8x32xf32>
    %9 = tpu.matmul %7, %8, %cst_11 {dimension_numbers = #tpu.dot_dimension_numbers<[1], [0], [0], [1], [0, 0, 1, 1], [], []>} : vector<8x8xf32>, vector<8x32xf32>, vector<8x32xf32> -> vector<8x32xf32>
    %10 = arith.addf %4, %9 : vector<8x32xf32>
    %c0_12 = arith.constant 0 : index
    %c0_13 = arith.constant 0 : index
    %c0_14 = arith.constant 0 : index
    %11 = vector.load %arg4[%c0_12, %c0_13, %c0_14] : memref<3x8x8xf32, #tpu.memory_space<vmem>>, vector<1x8x8xf32>
    %12 = vector.shape_cast %11 : vector<1x8x8xf32> to vector<8x8xf32>
    %13 = vector.extract_strided_slice %3 {offsets = [0, 96], sizes = [8, 32], strides = [1, 1]} : vector<8x192xf32> to vector<8x32xf32>
    %cst_15 = arith.constant dense<0.000000e+00> : vector<8x32xf32>
    %14 = tpu.matmul %12, %13, %cst_15 {dimension_numbers = #tpu.dot_dimension_numbers<[1], [0], [0], [1], [0, 0, 1, 1], [], []>} : vector<8x8xf32>, vector<8x32xf32>, vector<8x32xf32> -> vector<8x32xf32>
    %15 = arith.addf %5, %14 : vector<8x32xf32>
    %c1 = arith.constant 1 : index
    %c0_16 = arith.constant 0 : index
    %c0_17 = arith.constant 0 : index
    %16 = vector.load %arg3[%c1, %c0_16, %c0_17] : memref<3x8x8xf32, #tpu.memory_space<vmem>>, vector<1x8x8xf32>
    %17 = vector.shape_cast %16 : vector<1x8x8xf32> to vector<8x8xf32>
    %18 = vector.extract_strided_slice %3 {offsets = [0, 32], sizes = [8, 32], strides = [1, 1]} : vector<8x192xf32> to vector<8x32xf32>
    %cst_18 = arith.constant dense<0.000000e+00> : vector<8x32xf32>
    %19 = tpu.matmul %17, %18, %cst_18 {dimension_numbers = #tpu.dot_dimension_numbers<[1], [0], [0], [1], [0, 0, 1, 1], [], []>} : vector<8x8xf32>, vector<8x32xf32>, vector<8x32xf32> -> vector<8x32xf32>
    %20 = arith.addf %10, %19 : vector<8x32xf32>
    %c1_19 = arith.constant 1 : index
    %c0_20 = arith.constant 0 : index
    %c0_21 = arith.constant 0 : index
    %21 = vector.load %arg4[%c1_19, %c0_20, %c0_21] : memref<3x8x8xf32, #tpu.memory_space<vmem>>, vector<1x8x8xf32>
    %22 = vector.shape_cast %21 : vector<1x8x8xf32> to vector<8x8xf32>
    %23 = vector.extract_strided_slice %3 {offsets = [0, 128], sizes = [8, 32], strides = [1, 1]} : vector<8x192xf32> to vector<8x32xf32>
    %cst_22 = arith.constant dense<0.000000e+00> : vector<8x32xf32>
    %24 = tpu.matmul %22, %23, %cst_22 {dimension_numbers = #tpu.dot_dimension_numbers<[1], [0], [0], [1], [0, 0, 1, 1], [], []>} : vector<8x8xf32>, vector<8x32xf32>, vector<8x32xf32> -> vector<8x32xf32>
    %25 = arith.addf %15, %24 : vector<8x32xf32>
    %c2 = arith.constant 2 : index
    %c0_23 = arith.constant 0 : index
    %c0_24 = arith.constant 0 : index
    %26 = vector.load %arg3[%c2, %c0_23, %c0_24] : memref<3x8x8xf32, #tpu.memory_space<vmem>>, vector<1x8x8xf32>
    %27 = vector.shape_cast %26 : vector<1x8x8xf32> to vector<8x8xf32>
    %28 = vector.extract_strided_slice %3 {offsets = [0, 64], sizes = [8, 32], strides = [1, 1]} : vector<8x192xf32> to vector<8x32xf32>
    %cst_25 = arith.constant dense<0.000000e+00> : vector<8x32xf32>
    %29 = tpu.matmul %27, %28, %cst_25 {dimension_numbers = #tpu.dot_dimension_numbers<[1], [0], [0], [1], [0, 0, 1, 1], [], []>} : vector<8x8xf32>, vector<8x32xf32>, vector<8x32xf32> -> vector<8x32xf32>
    %30 = arith.addf %20, %29 : vector<8x32xf32>
    %c2_26 = arith.constant 2 : index
    %c0_27 = arith.constant 0 : index
    %c0_28 = arith.constant 0 : index
    %31 = vector.load %arg4[%c2_26, %c0_27, %c0_28] : memref<3x8x8xf32, #tpu.memory_space<vmem>>, vector<1x8x8xf32>
    %32 = vector.shape_cast %31 : vector<1x8x8xf32> to vector<8x8xf32>
    %33 = vector.extract_strided_slice %3 {offsets = [0, 160], sizes = [8, 32], strides = [1, 1]} : vector<8x192xf32> to vector<8x32xf32>
    %cst_29 = arith.constant dense<0.000000e+00> : vector<8x32xf32>
    %34 = tpu.matmul %32, %33, %cst_29 {dimension_numbers = #tpu.dot_dimension_numbers<[1], [0], [0], [1], [0, 0, 1, 1], [], []>} : vector<8x8xf32>, vector<8x32xf32>, vector<8x32xf32> -> vector<8x32xf32>
    %35 = arith.addf %25, %34 : vector<8x32xf32>
    %c0_30 = arith.constant 0 : index
    %c0_31 = arith.constant 0 : index
    %36 = vector.load %arg7[%c0_30, %c0_31] : memref<32x256xf32, #tpu.memory_space<vmem>>, vector<32x256xf32>
    %cst_32 = arith.constant dense<0.000000e+00> : vector<8x256xf32>
    %37 = tpu.matmul %30, %36, %cst_32 {dimension_numbers = #tpu.dot_dimension_numbers<[1], [0], [0], [1], [0, 0, 1, 1], [], []>} : vector<8x32xf32>, vector<32x256xf32>, vector<8x256xf32> -> vector<8x256xf32>
    %c0_33 = arith.constant 0 : index
    %c0_34 = arith.constant 0 : index
    %38 = vector.load %arg8[%c0_33, %c0_34] : memref<32x256xf32, #tpu.memory_space<vmem>>, vector<32x256xf32>
    %cst_35 = arith.constant dense<0.000000e+00> : vector<8x256xf32>
    %39 = tpu.matmul %35, %38, %cst_35 {dimension_numbers = #tpu.dot_dimension_numbers<[1], [0], [0], [1], [0, 0, 1, 1], [], []>} : vector<8x32xf32>, vector<32x256xf32>, vector<8x256xf32> -> vector<8x256xf32>
    %40 = arith.addf %37, %39 : vector<8x256xf32>
    %41 = arith.extf %1 : vector<8x256xbf16> to vector<8x256xf32>
    %42 = arith.mulf %41, %40 : vector<8x256xf32>
    %43 = arith.truncf %42 : vector<8x256xf32> to vector<8x256xbf16>
    %c0_36 = arith.constant 0 : index
    %c0_37 = arith.constant 0 : index
    %c0_38 = arith.constant 0 : index
    %44 = vector.load %arg9[%c0_36, %c0_37, %c0_38] : memref<1x8x256xbf16, #tpu.memory_space<vmem>>, vector<1x8x256xbf16>
    %45 = vector.shape_cast %44 : vector<1x8x256xbf16> to vector<8x256xbf16>
    %46 = vector.shape_cast %43 : vector<8x256xbf16> to vector<1x8x256xbf16>
    tpu.vector_store %arg9[%c0_36, %c0_37, %c0_38], %46 {strides = array<i32>} : memref<1x8x256xbf16, #tpu.memory_space<vmem>>, vector<1x8x256xbf16>,
    return
  }
  func.func @transform_0(%arg0: i32) -> (i32, i32, i32) {
    %c0_i32 = arith.constant 0 : i32
    %c0_i32_0 = arith.constant 0 : i32
    %c0_i32_1 = arith.constant 0 : i32
    return %arg0, %c0_i32, %c0_i32_0 : i32, i32, i32
  }
  func.func @transform_1(%arg0: i32) -> (i32, i32) {
    %c0_i32 = arith.constant 0 : i32
    %c0_i32_0 = arith.constant 0 : i32
    %c0_i32_1 = arith.constant 0 : i32
    return %c0_i32, %c0_i32_0 : i32, i32
  }
  func.func @transform_2(%arg0: i32) -> (i32, i32, i32) {
    %c0_i32 = arith.constant 0 : i32
    %c0_i32_0 = arith.constant 0 : i32
    %c0_i32_1 = arith.constant 0 : i32
    %c0_i32_2 = arith.constant 0 : i32
    return %c0_i32, %c0_i32_0, %c0_i32_1 : i32, i32, i32
  }
  func.func @transform_3(%arg0: i32) -> (i32, i32, i32) {
    %c0_i32 = arith.constant 0 : i32
    %c0_i32_0 = arith.constant 0 : i32
    %c0_i32_1 = arith.constant 0 : i32
    %c0_i32_2 = arith.constant 0 : i32
    return %c0_i32, %c0_i32_0, %c0_i32_1 : i32, i32, i32
  }
  func.func @transform_4(%arg0: i32) -> (i32, i32) {
    %c0_i32 = arith.constant 0 : i32
    %c0_i32_0 = arith.constant 0 : i32
    %c0_i32_1 = arith.constant 0 : i32
    return %c0_i32, %c0_i32_0 : i32, i32
  }
  func.func @transform_5(%arg0: i32) -> (i32, i32) {
    %c0_i32 = arith.constant 0 : i32
    %c0_i32_0 = arith.constant 0 : i32
    %c0_i32_1 = arith.constant 0 : i32
    return %c0_i32, %c0_i32_0 : i32, i32
  }
  func.func @transform_6(%arg0: i32) -> (i32, i32) {
    %c0_i32 = arith.constant 0 : i32
    %c0_i32_0 = arith.constant 0 : i32
    %c0_i32_1 = arith.constant 0 : i32
    return %c0_i32, %c0_i32_0 : i32, i32
  }
  func.func @transform_7(%arg0: i32) -> (i32, i32) {
    %c0_i32 = arith.constant 0 : i32
    %c0_i32_0 = arith.constant 0 : i32
    %c0_i32_1 = arith.constant 0 : i32
    return %c0_i32, %c0_i32_0 : i32, i32
  }
  func.func @transform_8(%arg0: i32) -> (i32, i32, i32) {
    %c0_i32 = arith.constant 0 : i32
    %c0_i32_0 = arith.constant 0 : i32
    %c0_i32_1 = arith.constant 0 : i32
    return %arg0, %c0_i32, %c0_i32_0 : i32, i32, i32
  }
}

module attributes {stable_mosaic.version = 11 : i64} {
  func.func @h3_kernel(%arg0: i32, %arg1: memref<1x8x256xbf16, #tpu.memory_space<vmem>>, %arg2: memref<256x192xbf16, #tpu.memory_space<vmem>>, %arg3: memref<3x8x8xf32, #tpu.memory_space<vmem>>, %arg4: memref<3x8x8xf32, #tpu.memory_space<vmem>>, %arg5: memref<8x32xf32, #tpu.memory_space<vmem>>, %arg6: memref<8x32xf32, #tpu.memory_space<vmem>>, %arg7: memref<32x256xf32, #tpu.memory_space<vmem>>, %arg8: memref<32x256xf32, #tpu.memory_space<vmem>>, %arg9: memref<1x8x256xbf16, #tpu.memory_space<vmem>>) attributes {dimension_semantics = [#tpu.dimension_semantics<parallel>], iteration_bounds = array<i64: 2>, scalar_prefetch = 0 : i64, scratch_operands = 0 : i64, tpu.core_type = #tpu.core_type<tc>, window_params = [{transform_indices = @transform_0, window_bounds = array<i64: 1, 8, 256>}, {pipeline_mode = #tpu.pipeline_mode<synchronous>, transform_indices = @transform_1, window_bounds = array<i64: 256, 192>}, {pipeline_mode = #tpu.pipeline_mode<synchronous>, transform_indices = @transform_2, window_bounds = array<i64: 3, 8, 8>}, {pipeline_mode = #tpu.pipeline_mode<synchronous>, transform_indices = @transform_3, window_bounds = array<i64: 3, 8, 8>}, {pipeline_mode = #tpu.pipeline_mode<synchronous>, transform_indices = @transform_4, window_bounds = array<i64: 8, 32>}, {pipeline_mode = #tpu.pipeline_mode<synchronous>, transform_indices = @transform_5, window_bounds = array<i64: 8, 32>}, {pipeline_mode = #tpu.pipeline_mode<synchronous>, transform_indices = @transform_6, window_bounds = array<i64: 32, 256>}, {pipeline_mode = #tpu.pipeline_mode<synchronous>, transform_indices = @transform_7, window_bounds = array<i64: 32, 256>}, {transform_indices = @transform_8, window_bounds = array<i64: 1, 8, 256>}]} {
    %c0 = arith.constant 0 : index
    %c0_0 = arith.constant 0 : index
    %c0_1 = arith.constant 0 : index
    %0 = vector.load %arg1[%c0, %c0_0, %c0_1] : memref<1x8x256xbf16, #tpu.memory_space<vmem>>, vector<1x8x256xbf16>
    %1 = vector.shape_cast %0 : vector<1x8x256xbf16> to vector<8x256xbf16>
    %c0_2 = arith.constant 0 : index
    %c0_3 = arith.constant 0 : index
    %2 = vector.load %arg2[%c0_2, %c0_3] : memref<256x192xbf16, #tpu.memory_space<vmem>>, vector<256x192xbf16>
    %cst = arith.constant dense<0.000000e+00> : vector<8x192xf32>
    %3 = tpu.matmul %1, %2, %cst {dimension_numbers = #tpu.dot_dimension_numbers<[1], [0], [0], [1], [0, 0, 1, 1], [], []>} : vector<8x256xbf16>, vector<256x192xbf16>, vector<8x192xf32> -> vector<8x192xf32>
    %c0_4 = arith.constant 0 : index
    %c0_5 = arith.constant 0 : index
    %4 = vector.load %arg5[%c0_4, %c0_5] : memref<8x32xf32, #tpu.memory_space<vmem>>, vector<8x32xf32>
    %c0_6 = arith.constant 0 : index
    %c0_7 = arith.constant 0 : index
    %5 = vector.load %arg6[%c0_6, %c0_7] : memref<8x32xf32, #tpu.memory_space<vmem>>, vector<8x32xf32>
    %c0_8 = arith.constant 0 : index
    %c0_9 = arith.constant 0 : index
    %c0_10 = arith.constant 0 : index
    %6 = vector.load %arg3[%c0_8, %c0_9, %c0_10] : memref<3x8x8xf32, #tpu.memory_space<vmem>>, vector<1x8x8xf32>
    %7 = vector.shape_cast %6 : vector<1x8x8xf32> to vector<8x8xf32>
    %8 = vector.extract_strided_slice %3 {offsets = [0, 0], sizes = [8, 32], strides = [1, 1]} : vector<8x192xf32> to vector<8x32xf32>
    %cst_11 = arith.constant dense<0.000000e+00> : vector<8x32xf32>
    %9 = tpu.matmul %7, %8, %cst_11 {dimension_numbers = #tpu.dot_dimension_numbers<[1], [0], [0], [1], [0, 0, 1, 1], [], []>} : vector<8x8xf32>, vector<8x32xf32>, vector<8x32xf32> -> vector<8x32xf32>
    %10 = arith.addf %4, %9 : vector<8x32xf32>
    %c0_12 = arith.constant 0 : index
    %c0_13 = arith.constant 0 : index
    %c0_14 = arith.constant 0 : index
    %11 = vector.load %arg4[%c0_12, %c0_13, %c0_14] : memref<3x8x8xf32, #tpu.memory_space<vmem>>, vector<1x8x8xf32>
    %12 = vector.shape_cast %11 : vector<1x8x8xf32> to vector<8x8xf32>
    %13 = vector.extract_strided_slice %3 {offsets = [0, 96], sizes = [8, 32], strides = [1, 1]} : vector<8x192xf32> to vector<8x32xf32>
    %cst_15 = arith.constant dense<0.000000e+00> : vector<8x32xf32>
    %14 = tpu.matmul %12, %13, %cst_15 {dimension_numbers = #tpu.dot_dimension_numbers<[1], [0], [0], [1], [0, 0, 1, 1], [], []>} : vector<8x8xf32>, vector<8x32xf32>, vector<8x32xf32> -> vector<8x32xf32>
    %15 = arith.addf %5, %14 : vector<8x32xf32>
    %c1 = arith.constant 1 : index
    %c0_16 = arith.constant 0 : index
    %c0_17 = arith.constant 0 : index
    %16 = vector.load %arg3[%c1, %c0_16, %c0_17] : memref<3x8x8xf32, #tpu.memory_space<vmem>>, vector<1x8x8xf32>
    %17 = vector.shape_cast %16 : vector<1x8x8xf32> to vector<8x8xf32>
    %18 = vector.extract_strided_slice %3 {offsets = [0, 32], sizes = [8, 32], strides = [1, 1]} : vector<8x192xf32> to vector<8x32xf32>
    %cst_18 = arith.constant dense<0.000000e+00> : vector<8x32xf32>
    %19 = tpu.matmul %17, %18, %cst_18 {dimension_numbers = #tpu.dot_dimension_numbers<[1], [0], [0], [1], [0, 0, 1, 1], [], []>} : vector<8x8xf32>, vector<8x32xf32>, vector<8x32xf32> -> vector<8x32xf32>
    %20 = arith.addf %10, %19 : vector<8x32xf32>
    %c1_19 = arith.constant 1 : index
    %c0_20 = arith.constant 0 : index
    %c0_21 = arith.constant 0 : index
    %21 = vector.load %arg4[%c1_19, %c0_20, %c0_21] : memref<3x8x8xf32, #tpu.memory_space<vmem>>, vector<1x8x8xf32>
    %22 = vector.shape_cast %21 : vector<1x8x8xf32> to vector<8x8xf32>
    %23 = vector.extract_strided_slice %3 {offsets = [0, 128], sizes = [8, 32], strides = [1, 1]} : vector<8x192xf32> to vector<8x32xf32>
    %cst_22 = arith.constant dense<0.000000e+00> : vector<8x32xf32>
    %24 = tpu.matmul %22, %23, %cst_22 {dimension_numbers = #tpu.dot_dimension_numbers<[1], [0], [0], [1], [0, 0, 1, 1], [], []>} : vector<8x8xf32>, vector<8x32xf32>, vector<8x32xf32> -> vector<8x32xf32>
    %25 = arith.addf %15, %24 : vector<8x32xf32>
    %c2 = arith.constant 2 : index
    %c0_23 = arith.constant 0 : index
    %c0_24 = arith.constant 0 : index
    %26 = vector.load %arg3[%c2, %c0_23, %c0_24] : memref<3x8x8xf32, #tpu.memory_space<vmem>>, vector<1x8x8xf32>
    %27 = vector.shape_cast %26 : vector<1x8x8xf32> to vector<8x8xf32>
    %28 = vector.extract_strided_slice %3 {offsets = [0, 64], sizes = [8, 32], strides = [1, 1]} : vector<8x192xf32> to vector<8x32xf32>
    %cst_25 = arith.constant dense<0.000000e+00> : vector<8x32xf32>
    %29 = tpu.matmul %27, %28, %cst_25 {dimension_numbers = #tpu.dot_dimension_numbers<[1], [0], [0], [1], [0, 0, 1, 1], [], []>} : vector<8x8xf32>, vector<8x32xf32>, vector<8x32xf32> -> vector<8x32xf32>
    %30 = arith.addf %20, %29 : vector<8x32xf32>
    %c2_26 = arith.constant 2 : index
    %c0_27 = arith.constant 0 : index
    %c0_28 = arith.constant 0 : index
    %31 = vector.load %arg4[%c2_26, %c0_27, %c0_28] : memref<3x8x8xf32, #tpu.memory_space<vmem>>, vector<1x8x8xf32>
    %32 = vector.shape_cast %31 : vector<1x8x8xf32> to vector<8x8xf32>
    %33 = vector.extract_strided_slice %3 {offsets = [0, 160], sizes = [8, 32], strides = [1, 1]} : vector<8x192xf32> to vector<8x32xf32>
    %cst_29 = arith.constant dense<0.000000e+00> : vector<8x32xf32>
    %34 = tpu.matmul %32, %33, %cst_29 {dimension_numbers = #tpu.dot_dimension_numbers<[1], [0], [0], [1], [0, 0, 1, 1], [], []>} : vector<8x8xf32>, vector<8x32xf32>, vector<8x32xf32> -> vector<8x32xf32>
    %35 = arith.addf %25, %34 : vector<8x32xf32>
    %c0_30 = arith.constant 0 : index
    %c0_31 = arith.constant 0 : index
    %36 = vector.load %arg7[%c0_30, %c0_31] : memref<32x256xf32, #tpu.memory_space<vmem>>, vector<32x256xf32>
    %cst_32 = arith.constant dense<0.000000e+00> : vector<8x256xf32>
    %37 = tpu.matmul %30, %36, %cst_32 {dimension_numbers = #tpu.dot_dimension_numbers<[1], [0], [0], [1], [0, 0, 1, 1], [], []>} : vector<8x32xf32>, vector<32x256xf32>, vector<8x256xf32> -> vector<8x256xf32>
    %c0_33 = arith.constant 0 : index
    %c0_34 = arith.constant 0 : index
    %38 = vector.load %arg8[%c0_33, %c0_34] : memref<32x256xf32, #tpu.memory_space<vmem>>, vector<32x256xf32>
    %cst_35 = arith.constant dense<0.000000e+00> : vector<8x256xf32>
    %39 = tpu.matmul %35, %38, %cst_35 {dimension_numbers = #tpu.dot_dimension_numbers<[1], [0], [0], [1], [0, 0, 1, 1], [], []>} : vector<8x32xf32>, vector<32x256xf32>, vector<8x256xf32> -> vector<8x256xf32>
    %40 = arith.addf %37, %39 : vector<8x256xf32>
    %41 = arith.extf %1 : vector<8x256xbf16> to vector<8x256xf32>
    %42 = arith.mulf %41, %40 : vector<8x256xf32>
    %43 = arith.truncf %42 : vector<8x256xf32> to vector<8x256xbf16>
    %c0_36 = arith.constant 0 : index
    %c0_37 = arith.constant 0 : index
    %c0_38 = arith.constant 0 : index
    %44 = vector.load %arg9[%c0_36, %c0_37, %c0_38] : memref<1x8x256xbf16, #tpu.memory_space<vmem>>, vector<1x8x256xbf16>
    %45 = vector.shape_cast %44 : vector<1x8x256xbf16> to vector<8x256xbf16>
    %46 = vector.shape_cast %43 : vector<8x256xbf16> to vector<1x8x256xbf16>
    tpu.vector_store %arg9[%c0_36, %c0_37, %c0_38], %46 {strides = array<i32>} : memref<1x8x256xbf16, #tpu.memory_space<vmem>>, vector<1x8x256xbf16>,
    return
  }
  func.func @transform_0(%arg0: i32) -> (i32, i32, i32) {
    %c0_i32 = arith.constant 0 : i32
    %c0_i32_0 = arith.constant 0 : i32
    %c0_i32_1 = arith.constant 0 : i32
    return %arg0, %c0_i32, %c0_i32_0 : i32, i32, i32
  }
  func.func @transform_1(%arg0: i32) -> (i32, i32) {
    %c0_i32 = arith.constant 0 : i32
    %c0_i32_0 = arith.constant 0 : i32
    %c0_i32_1 = arith.constant 0 : i32
    return %c0_i32, %c0_i32_0 : i32, i32
  }
  func.func @transform_2(%arg0: i32) -> (i32, i32, i32) {
    %c0_i32 = arith.constant 0 : i32
    %c0_i32_0 = arith.constant 0 : i32
    %c0_i32_1 = arith.constant 0 : i32
    %c0_i32_2 = arith.constant 0 : i32
    return %c0_i32, %c0_i32_0, %c0_i32_1 : i32, i32, i32
  }
  func.func @transform_3(%arg0: i32) -> (i32, i32, i32) {
    %c0_i32 = arith.constant 0 : i32
    %c0_i32_0 = arith.constant 0 : i32
    %c0_i32_1 = arith.constant 0 : i32
    %c0_i32_2 = arith.constant 0 : i32
    return %c0_i32, %c0_i32_0, %c0_i32_1 : i32, i32, i32
  }
  func.func @transform_4(%arg0: i32) -> (i32, i32) {
    %c0_i32 = arith.constant 0 : i32
    %c0_i32_0 = arith.constant 0 : i32
    %c0_i32_1 = arith.constant 0 : i32
    return %c0_i32, %c0_i32_0 : i32, i32
  }
  func.func @transform_5(%arg0: i32) -> (i32, i32) {
    %c0_i32 = arith.constant 0 : i32
    %c0_i32_0 = arith.constant 0 : i32
    %c0_i32_1 = arith.constant 0 : i32
    return %c0_i32, %c0_i32_0 : i32, i32
  }
  func.func @transform_6(%arg0: i32) -> (i32, i32) {
    %c0_i32 = arith.constant 0 : i32
    %c0_i32_0 = arith.constant 0 : i32
    %c0_i32_1 = arith.constant 0 : i32
    return %c0_i32, %c0_i32_0 : i32, i32
  }
  func.func @transform_7(%arg0: i32) -> (i32, i32) {
    %c0_i32 = arith.constant 0 : i32
    %c0_i32_0 = arith.constant 0 : i32
    %c0_i32_1 = arith.constant 0 : i32
    return %c0_i32, %c0_i32_0 : i32, i32
  }
  func.func @transform_8(%arg0: i32) -> (i32, i32, i32) {
    %c0_i32 = arith.constant 0 : i32
    %c0_i32_0 = arith.constant 0 : i32
    %c0_i32_1 = arith.constant 0 : i32
    return %arg0, %c0_i32, %c0_i32_0 : i32, i32, i32
  }
}

</mosaic_0001>

<bundles_post_ra>
// kernel: tpu_custom_call.1
= control target key start
LH: loop header
LB: loop body
LE: loop exit
PB: predicated region body
PF: predicated region fallthrough
CT: control target
= control target key end

     0   :  { %13 = vsyncpa [#allocation3], 0  ;;  %s1911_s0 = inlined_call_operand.vmem [shape: bf16[2,8,256], index: 0, kind: input, shape index: {}]   ;;  %s1912_s1 = inlined_call_operand.vmem [shape: bf16[256,192], index: 1, kind: input, shape index: {}]   ;;  %s1913_s2 = inlined_call_operand.vmem [shape: f32[3,8,8], index: 2, kind: input, shape index: {}]   ;;  %s1914_s3 = inlined_call_operand.vmem [shape: f32[3,8,8], index: 3, kind: input, shape index: {}]   ;;  %s1915_s4 = inlined_call_operand.vmem [shape: f32[8,32], index: 4, kind: input, shape index: {}]   ;;  %s1916_s5 = inlined_call_operand.vmem [shape: f32[8,32], index: 5, kind: input, shape index: {}]   ;;  %s1917_s6 = inlined_call_operand.vmem [shape: f32[32,256], index: 6, kind: input, shape index: {}]   ;;  %s1918_s7 = inlined_call_operand.vmem [shape: f32[32,256], index: 7, kind: input, shape index: {}]   ;;  %s1919_s8 = inlined_call_operand.hbm [shape: bf16[2,8,256], index: 8, kind: output, shape index: {}]  }
   0x1   :  { %15 = vsyncpa [#allocation3 + $0x1], 0  ;;  %s1609_s27 = smov 0   ;;  %s1611_s28 = smov 0  }
   0x2   :  { %s1613_s29 = smov 0   ;;  %s1615_s30 = smov 0  }
   0x3 LB: > { %s1630_s9 = sadd.s32 4294967295, %s1556_s30   ;;  %s1268_s10 = sadd.s32 4294967294, %s1556_s30   ;;  %s1556_s30 = sphi %s1615_s30, %s1925_s30   ;;  %s1552_s29 = sphi %s1613_s29, %s1924_s29   ;;  %s1548_s28 = sphi %s1611_s28, %s1923_s28   ;;  %s1544_s27 = sphi %s1609_s27, %s1922_s27  }
   0x4   : > { %s1634_s11 = sadd.s32 1, %s1556_s30   ;;  %s201_s12 = sadd.s32 1, %s1552_s29 }
   0x5   : > { %s198_s13 = ssub.s32 %s1556_s30, %s1634_s11  ;;  %p211_p0 = scmp.ne.s32.totalorder %s1552_s29, %s1548_s28 }
   0x6   : > { %p199_p1 = scmp.eq.s32.totalorder %s198_s13, 0  ;;  %p212_p2 = scmp.eq.s32.totalorder %s1630_s9, 1 }
   0x7   : > { %p217_p3 = scmp.ne.s32.totalorder %s1548_s28, %s1544_s27  ;;  %p218_p4 = scmp.eq.s32.totalorder %s1268_s10, 1 }
   0x8   : > { %s1645_s14 = scalar_select %p199_p1, %s1552_s29, %s201_s12  }
   0x9   : > { %p1647_p5 = por %p212_p2, %p211_p0  ;;  %p1651_p6 = por %p218_p4, %p217_p3 }
   0xa   : > { %p1271_p7 = scmp.ge.s32.totalorder %s1556_s30, 1  ;;  %p265_p8 = scmp.lt.s32.totalorder %s1556_s30, 3 }
   0xc   : > { %p266_p9 = pnand %p1271_p7, %p265_p8 }
   0xd   : > { %v1444_v0 = vld [vmem:[%s1912_s1 + $0x4] ss:$8 sps:$4 sm:$0xff] (!%p266_p9)   ;;  %v1446_v1 = vld [vmem:[%s1912_s1] ss:$8 sps:$4 sm:$0xff] (!%p266_p9)   ;;  %v1447_v2 = vld [vmem:[%s1912_s1 + $0x14] ss:$8 sps:$4 sm:$0xff] (!%p266_p9)  }
   0xe   : > { %269 = sbr.rel (%p266_p9) target bundleno = 875 (0x36b), region = 52  ;;  %504 = vmatprep.subr.bf16.mxu0 (!%p266_p9), %v1444_v0  ;;  %v1449_v3 = vld [vmem:[%s1912_s1 + $0x10] ss:$8 sps:$4 sm:$0xff] (!%p266_p9)   ;;  %v1450_v4 = vld [vmem:[%s1912_s1 + $0x24] ss:$8 sps:$4 sm:$0xff] (!%p266_p9)   ;;  %p299_p10 = scmp.lt.s32.totalorder (!%p266_p9), %s1630_s9, 1 }
   0xf   : > { %505 = vmatpush1.bf16.msra.mxu0 (!%p266_p9), %v1446_v1  ;;  %v1452_v5 = vld [vmem:[%s1912_s1 + $0x20] ss:$8 sps:$4 sm:$0xff] (!%p266_p9)   ;;  %v1453_v6 = vld [vmem:[%s1912_s1 + $0x34] ss:$8 sps:$4 sm:$0xff] (!%p266_p9)   ;;  %v1455_v7 = vld [vmem:[%s1912_s1 + $0x30] ss:$8 sps:$4 sm:$0xff] (!%p266_p9)  }
  0x10   : > { %506 = vmatprep.subr.bf16.mxu0 (!%p266_p9), %v1447_v2  ;;  %v1456_v8 = vld [vmem:[%s1912_s1 + $0x44] ss:$8 sps:$4 sm:$0xff] (!%p266_p9)   ;;  %v1458_v9 = vld [vmem:[%s1912_s1 + $0x40] ss:$8 sps:$4 sm:$0xff] (!%p266_p9)   ;;  %v1459_v10 = vld [vmem:[%s1912_s1 + $0x54] ss:$8 sps:$4 sm:$0xff] (!%p266_p9)  }
  0x11   : > { %v1461_v11 = vld [vmem:[%s1912_s1 + $0x50] ss:$8 sps:$4 sm:$0xff] (!%p266_p9)   ;;  %v1462_v12 = vld [vmem:[%s1912_s1 + $0x64] ss:$8 sps:$4 sm:$0xff] (!%p266_p9)   ;;  %v1464_v15 = vld [vmem:[%s1912_s1 + $0x60] ss:$8 sps:$4 sm:$0xff] (!%p266_p9)  }
  0x12   : > { %v1465_v16 = vld [vmem:[%s1912_s1 + $0x74] ss:$8 sps:$4 sm:$0xff] (!%p266_p9)   ;;  %v1467_v17 = vld [vmem:[%s1912_s1 + $0x70] ss:$8 sps:$4 sm:$0xff] (!%p266_p9)   ;;  %v1468_v18 = vld [vmem:[%s1912_s1 + $0x84] ss:$8 sps:$4 sm:$0xff] (!%p266_p9)  }
  0x13   : > { %507 = vmatpush1.bf16.msra.mxu0 (!%p266_p9), %v1449_v3  ;;  %v1470_v19 = vld [vmem:[%s1912_s1 + $0x80] ss:$8 sps:$4 sm:$0xff] (!%p266_p9)   ;;  %v1471_v20 = vld [vmem:[%s1912_s1 + $0x94] ss:$8 sps:$4 sm:$0xff] (!%p266_p9)   ;;  %v1473_v21 = vld [vmem:[%s1912_s1 + $0x90] ss:$8 sps:$4 sm:$0xff] (!%p266_p9)  }
  0x14   : > { %508 = vmatprep.subr.bf16.mxu0 (!%p266_p9), %v1450_v4  ;;  %v1474_v22 = vld [vmem:[%s1912_s1 + $0xa4] ss:$8 sps:$4 sm:$0xff] (!%p266_p9)   ;;  %v1476_v23 = vld [vmem:[%s1912_s1 + $0xa0] ss:$8 sps:$4 sm:$0xff] (!%p266_p9)   ;;  %v1477_v24 = vld [vmem:[%s1912_s1 + $0xb4] ss:$8 sps:$4 sm:$0xff] (!%p266_p9)  }
  0x15   : > { %s300_s20 = scalar_select %p299_p10, %s1630_s9, 1  ;;  %v1479_v25 = vld [vmem:[%s1912_s1 + $0xb0] ss:$8 sps:$4 sm:$0xff]   ;;  %v1480_v26 = vld [vmem:[%s1912_s1 + $0xc4] ss:$8 sps:$4 sm:$0xff]   ;;  %v1558_v35 = vmov 0.0  }
  0x16   : > { %v1482_v27 = vld [vmem:[%s1912_s1 + $0xc0] ss:$8 sps:$4 sm:$0xff]   ;;  %v1483_v28 = vld [vmem:[%s1912_s1 + $0xd4] ss:$8 sps:$4 sm:$0xff]   ;;  %v1485_v29 = vld [vmem:[%s1912_s1 + $0xd0] ss:$8 sps:$4 sm:$0xff]   ;;  %1342 = vmatprep.subr.mxu1 %v1558_v35 }
  0x17   : > { %509 = vmatpush1.bf16.msra.mxu0 %v1452_v5  ;;  %s1327_s25 = sshll.u32 %s300_s20, 3  ;;  %v1486_v30 = vld [vmem:[%s1912_s1 + $0xe4] ss:$8 sps:$4 sm:$0xff]   ;;  %v1488_v31 = vld [vmem:[%s1912_s1 + $0xe0] ss:$8 sps:$4 sm:$0xff]   ;;  %vm1559_vm0 = vmmov 0  }
  0x18   : > { %510 = vmatprep.subr.bf16.mxu0 %v1453_v6  ;;  %s303_s17 = scalar_lea.vmem %s1911_s0, %s1327_s25  ;;  %v1489_v32 = vld [vmem:[%s1912_s1 + $0xf4] ss:$8 sps:$4 sm:$0xff]   ;;  %v1491_v33 = vld [vmem:[%s1912_s1 + $0xf0] ss:$8 sps:$4 sm:$0xff]   ;;  %1344 = vmatprep.mubr.msk.f32.mxu1 %vm1559_vm0, %v1558_v35  ;;  %v547_v37 = vld [vmem:[%s1913_s2] sm:$0xff]  ;;  %vm548_vm1 = vcmask 64512  }
  0x19   : > { %v1701_v13 = vld [vmem:[%s303_s17] sm:$0xff]  ;;  %s1560_s23 = smov 64   ;;  %s1561_s24 = smov 32   ;;  %v1311_v43 = vld [vmem:[%s1913_s2 + $0x8] sm:$0xff]  ;;  %v1027_v48 = vld [vmem:[%s1918_s7 + $0x18] sm:$0xff]  ;;  %vm1032_vm2 = vcmask 261120  }
  0x1a   : > { %v1276_v14 = vcombine.high %v1701_v13, %v1701_v13  ;;  %v1275_v34 = vcombine.low %v1701_v13, %v1701_v13  ;;  %s1562_s25 = smov 96   ;;  %v623_v41 = vld [vmem:[%s1914_s3] sm:$0xff]  ;;  %v1313_v45 = vld [vmem:[%s1914_s3 + $0x8] sm:$0xff]  ;;  %v1315_v49 = vld [vmem:[%s1913_s2 + $0x10] sm:$0xff]  ;;  %s296_s21 = sand.u32 1, %s1548_s28  }
  0x1b   : > { %511 = vmatpush1.bf16.msra.mxu0 %v1455_v7  ;;  %v1025_v47 = vld [vmem:[%s1918_s7 + $0x8] sm:$0xff]  ;;  %v1317_v52 = vld [vmem:[%s1914_s3 + $0x10] sm:$0xff]  ;;  %v1024_v53 = vld [vmem:[%s1918_s7] sm:$0xff]  ;;  %s1272_s22 = sshll.u32 %s296_s21, 3  ;;  %s1329_s20 = sshll.u32 %s1630_s9, 7 }
  0x1c   : > { %512 = vmatprep.subr.bf16.mxu0 %v1456_v8  ;;  %536 = vmatprep.mubr.bf16.mxu0 %v1276_v14  ;;  %v1372_v50 = vpack.c.bf16 %v1027_v48, %v1025_v47  ;;  %v1026_v54 = vld [vmem:[%s1918_s7 + $0x10] sm:$0xff]  ;;  %v1029_v56 = vld [vmem:[%s1918_s7 + $0x28] sm:$0xff]  ;;  %v1031_v57 = vld [vmem:[%s1918_s7 + $0x38] sm:$0xff]  ;;  %s1869_s10 = scalar_lea.hbm %s1919_s8, %s1329_s20  ;;  %s1195_s12 = scalar_lea.sflag [#allocation3], %s296_s21 }
  0x1d   : > { %v1374_v55 = vpack.c.bf16 %v1026_v54, %v1024_v53  ;;  %v1376_v58 = vpack.c.bf16 %v1031_v57, %v1029_v56  ;;  %v1028_v59 = vld [vmem:[%s1918_s7 + $0x20] sm:$0xff]  ;;  %v1030_v60 = vld [vmem:[%s1918_s7 + $0x30] sm:$0xff]  ;;  %v1017_v62 = vld [vmem:[%s1917_s6 + $0x8] sm:$0xff]  ;;  %s1563_s9 = smov [#allocation2]  }
  0x1e   : > { %v1378_v61 = vpack.c.bf16 %v1030_v60, %v1028_v59  ;;  %v1019_v63 = vld [vmem:[%s1917_s6 + $0x18] sm:$0xff]  ;;  %v1016_v3 = vld [vmem:[%s1917_s6] sm:$0xff]  ;;  %v1018_v4 = vld [vmem:[%s1917_s6 + $0x10] sm:$0xff]  ;;  %s1498_s17 = sshll.u32 %s1563_s9, 4  ;;  %s1499_s17 = int_to_ptr.vmem [resolvable:$false] %s1498_s17 }
  0x1f   : > { %513 = vmatpush1.bf16.msra.mxu0 %v1458_v9  ;;  %v1380_v0 = vpack.c.bf16 %v1019_v63, %v1017_v62  ;;  %v546_v5 = vld [vmem:[%s1916_s5] sm:$0xff]  ;;  %v1021_v6 = vld [vmem:[%s1917_s6 + $0x28] sm:$0xff]  ;;  %v1023_v7 = vld [vmem:[%s1917_s6 + $0x38] sm:$0xff]  ;;  %v1382_v9 = vpack.c.bf16 %v1018_v4, %v1016_v3  ;;  %s1500_s18 = scalar_lea.vmem %s1499_s17, 256 }
  0x20   : > { %514 = vmatprep.subr.bf16.mxu0 %v1459_v10  ;;  %v1020_v14 = vld [vmem:[%s1917_s6 + $0x20] sm:$0xff] }
  0x23   : > { %515 = vmatpush1.bf16.msra.mxu0 %v1461_v11 }
  0x24   : > { %516 = vmatprep.subr.bf16.mxu0 %v1462_v12  ;;  %v1384_v12 = vpack.c.bf16 %v1023_v7, %v1021_v6 }
  0x27   : > { %517 = vmatpush1.bf16.msra.mxu0 %v1464_v15  ;;  %v1022_v15 = vld [vmem:[%s1917_s6 + $0x30] sm:$0xff] }
  0x28   : > { %518 = vmatprep.subr.bf16.mxu0 %v1465_v16  ;;  %v1386_v16 = vpack.c.bf16 %v1022_v15, %v1020_v14 }
  0x2b   : > { %519 = vmatpush1.bf16.msra.mxu0 %v1467_v17  ;;  %v545_v17 = vld [vmem:[%s1915_s4] sm:$0xff] }
  0x2c   : > { %520 = vmatprep.subr.bf16.mxu0 %v1468_v18 }
  0x2f   : > { %521 = vmatpush1.bf16.msra.mxu0 %v1470_v19  ;;  %v1181_v19 = vunpack.c.l.bf16 %v1701_v13 }
  0x30   : > { %522 = vmatprep.subr.bf16.mxu0 %v1471_v20  ;;  %v1182_v20 = vunpack.c.h.bf16 %v1701_v13 }
  0x33   : > { %523 = vmatpush1.bf16.msra.mxu0 %v1473_v21 }
  0x34   : > { %524 = vmatprep.subr.bf16.mxu0 %v1474_v22 }
  0x37   : > { %525 = vmatpush1.bf16.msra.mxu0 %v1476_v23 }
  0x38   : > { %526 = vmatprep.subr.bf16.mxu0 %v1477_v24 }
  0x3b   : > { %527 = vmatpush1.bf16.msra.mxu0 %v1479_v25 }
  0x3c   : > { %528 = vmatprep.subr.bf16.mxu0 %v1480_v26 }
  0x3f   : > { %529 = vmatpush1.bf16.msra.mxu0 %v1482_v27 }
  0x40   : > { %530 = vmatprep.subr.bf16.mxu0 %v1483_v28 }
  0x43   : > { %531 = vmatpush1.bf16.msra.mxu0 %v1485_v29 }
  0x44   : > { %532 = vmatprep.subr.bf16.mxu0 %v1486_v30 }
  0x47   : > { %533 = vmatpush1.bf16.msra.mxu0 %v1488_v31 }
  0x48   : > { %534 = vmatprep.subr.bf16.mxu0 %v1489_v32 }
  0x4b   : > { %535 = vmatpush1.bf16.msra.mxu0 %v1491_v33 }
  0x4e   : > { %537 = vmatmul.mubr.bf16.vlgmr.msra.gmra.mrb[0].mxu0 %v1275_v34 }
 0x121   : > { %v538_v36 = vpop.f32.mrb[0].mxu0 }
 0x122   : > { %859 = vrot.lane.b32.xlu1 %v538_v36, %s1560_s23  ;;  %625 = vrot.lane.b32.xlu0 %v538_v36, %s1561_s24  ;;  %v540_v38 = vpop.f32.mrb[1].mxu0  ;;  %s298_s23 = scalar_lea.vmem [#allocation2], %s1272_s22 }
 0x123   : > { %1343 = vmatpush3.msra.mxu1 %v538_v36  ;;  %v542_v39 = vpop.f32.mrb[2].mxu0  ;;  %s1209_s24 = sshll.u32 %s298_s23, 4  ;;  %s1871_s24 = int_to_ptr.vmem [resolvable:$true] %s1209_s24 }
 0x124   : > { %v543_v40 = vpop.f32.mrb[3].mxu0  ;;  %1345 = vmatmul.mubr.msk.f32.vlgmr.msra.gmra.mrb[0].mxu1 %vm548_vm1, %v547_v37  ;;  %1347 = vmatprep.subr.mxu1 %v1558_v35  ;;  %s1494_s13 = scalar_lea.vmem %s1871_s24, 128  ;;  %p1501_p0 = scmp.lt.s32.totalorder %s1871_s24, %s1499_s17 }
 0x125   : > { %1349 = vmatprep.mubr.msk.f32.mxu1 %vm1559_vm0, %v1558_v35  ;;  %p1495_p11 = scmp.ne.s32.totalorder %s1871_s24, %s1494_s13  ;;  %p1502_p1 = scmp.lt.s32.totalorder %s1500_s18, %s1494_s13 }
 0x126   : > { %704 = vrot.lane.b32.xlu0 %v538_v36, %s1562_s25  ;;  %939 = vrot.lane.b32.xlu1 %v540_v38, %s1562_s25 }
 0x127   : > { %p1496_p12 = pnand %p1495_p11, %p1647_p5  ;;  %p1503_p2 = por %p1502_p1, %p1501_p0 }
 0x129   : > { %p1497_p13 = pneg %p1496_p12 }
 0x12b   : > { %p1504_p3 = pnand %p1503_p2, %p1497_p13 }
 0x194   : > { %v626_v42 = vpop.permute.xlu0 %625  ;;  %v860_v46 = vpop.permute.xlu1 %859 }
 0x195   : > { %1348 = vmatpush3.msra.mxu1 %v626_v42 }
 0x196   : > { %1350 = vmatmul.mubr.msk.f32.vlgmr.msra.gmra.mrb[2].mxu1 %vm548_vm1, %v623_v41  ;;  %1352 = vmatprep.subr.mxu1 %v1558_v35 }
 0x197   : > { %1354 = vmatprep.mubr.msk.f32.mxu1 %vm1559_vm0, %v1558_v35 }
 0x198   : > { %v705_v44 = vpop.permute.xlu0 %704  ;;  %v940_v51 = vpop.permute.xlu1 %939 }
 0x199   : > { %1353 = vmatpush3.msra.mxu1 %v705_v44 }
 0x19a   : > { %1355 = vmatmul.mubr.msk.f32.vlgmr.msra.gmra.mrb[0].mxu1 %vm548_vm1, %v1311_v43  ;;  %1357 = vmatprep.subr.mxu1 %v1558_v35 }
 0x19b   : > { %1358 = vmatpush3.msra.mxu1 %v540_v38  ;;  %1359 = vmatprep.mubr.msk.f32.mxu1 %vm1559_vm0, %v1558_v35 }
 0x19c   : > { %1362 = vmatprep.subr.mxu1 %v1558_v35 }
 0x19e   : > { %1360 = vmatmul.mubr.msk.f32.vlgmr.msra.gmra.mrb[2].mxu1 %vm548_vm1, %v1313_v45 }
 0x19f   : > { %1363 = vmatpush3.msra.mxu1 %v860_v46  ;;  %1364 = vmatprep.mubr.msk.f32.mxu1 %vm1559_vm0, %v1558_v35 }
 0x1a0   : > { %1367 = vmatprep.subr.mxu1 %v1558_v35 }
 0x1a2   : > { %1365 = vmatmul.mubr.msk.f32.vlgmr.msra.gmra.mrb[0].mxu1 %vm548_vm1, %v1315_v49 }
 0x1a3   : > { %1368 = vmatpush3.msra.mxu1 %v940_v51  ;;  %1369 = vmatprep.mubr.msk.f32.mxu1 %vm1559_vm0, %v1558_v35 }
 0x1a4   : > { %1373 = vmatprep.subr.bf16.mxu1 %v1372_v50 }
 0x1a6   : > { %1370 = vmatmul.mubr.msk.f32.vlgmr.msra.gmra.mrb[2].mxu1 %vm548_vm1, %v1317_v52 }
 0x1a7   : > { %1100 = vmatprep.mubr.f32.mxu1 %v1558_v35  ;;  %1375 = vmatpush1.bf16.msra.mxu1 %v1374_v55 }
 0x1a8   : > { %1377 = vmatprep.subr.bf16.mxu1 %v1376_v58 }
 0x1ab   : > { %1379 = vmatpush1.bf16.msra.mxu1 %v1378_v61 }
 0x1ac   : > { %1381 = vmatprep.subr.bf16.mxu1 %v1380_v0 }
 0x275   : > { %v931_v1 = vpop.f32.mrb[0].mxu1 }
 0x276   : > { %v1366_v2 = vpop.f32.mrb[1].mxu1  ;;  %v1388_v18 = vadd.f32 %v931_v1, %v545_v17 }
 0x279   : > { %v1011_v8 = vpop.f32.mrb[2].mxu1 }
 0x27a   : > { %v1389_v10 = vadd.f32 %v1011_v8, %v546_v5  ;;  %v1371_v11 = vpop.f32.mrb[3].mxu1 }
 0x27c   : > { %1319 = vmatmul.mubr.msk.f32.vlgmr.msra.gmra.mrb[4].mxu1 %vm1032_vm2, %v1389_v10 }
 0x27d   : > { %1383 = vmatpush1.bf16.msra.mxu1 %v1382_v9  ;;  %1174 = vmatprep.mubr.f32.mxu1 %v1558_v35 }
 0x27e   : > { %1385 = vmatprep.subr.bf16.mxu1 %v1384_v12 }
 0x281   : > { %1387 = vmatpush1.bf16.msra.mxu1 %v1386_v16 }
 0x284   : > { %1320 = vmatmul.mubr.msk.f32.vlgmr.msra.gmra.mrb[4].mxu1 %vm1032_vm2, %v1388_v18 }
 0x357   : > { %v1176_v21 = vpop.f32.mrb[4].mxu1 }
 0x358   : > { %v1183_v22 = vmul.f32 %v1181_v19, %v1176_v21  ;;  %v1178_v23 = vpop.f32.mrb[5].mxu1 }
 0x359   : > { %v1184_v24 = vmul.f32 %v1182_v20, %v1178_v23 }
 0x35b   : > { %v1328_v25 = vpack.c.bf16 %v1184_v24, %v1183_v22 }
 0x35d   : > { %1193 = vst [vmem:[%s298_s23] sm:$0xff] %v1328_v25 }
 0x35e   : > { %1507 = shalt.err (!%p1504_p3)
}
 0x35f   : > { %s1508_s19 = scalar_lea.hbm %s1869_s10, 128  ;;  %s1512_s20 = scalar_lea.hbm %s1919_s8, 256 }
 0x360   : > { %p1509_p4 = scmp.ne.s32.totalorder %s1869_s10, %s1508_s19  ;;  %p1513_p9 = scmp.lt.u32.totalorder %s1869_s10, %s1919_s8 }
 0x361   : > { %p1514_p10 = scmp.lt.u32.totalorder %s1512_s20, %s1508_s19  ;;  %p1516_p12 = scmp.lt.u32.totalorder %s1508_s19, %s1869_s10 }
 0x362   : > { %p1510_p7 = pnand %p1509_p4, %p1647_p5 }
 0x363   : > { %p1515_p11 = por %p1514_p10, %p1513_p9 }
 0x364   : > { %p1511_p8 = pneg %p1510_p7 }
 0x365   : > { %p1517_p13 = por %p1516_p12, %p1515_p11 }
 0x367   : > { %p1518_p0 = pnand %p1517_p13, %p1511_p8 }
 0x369   : > { %1521 = shalt.err (!%p1518_p0)
}
 0x36a   : > { %1400 = dma.vmem_to_hbm [thread:$0]  (%p1647_p5), %s1871_s24, 128, %s1869_s10, %s1195_s12  }
 0x36b PF: > { %p1406_p1 = scmp.ge.s32.totalorder %s1556_s30, 2  ;;  %s1221_s26 = sand.u32 1, %s1544_s27  }
 0x36c   : > { %s1222_s13 = scalar_lea.sflag [#allocation3], %s1221_s26 }
 0x36d   : > { %p1403_p2 = pnand %p1406_p1, %p1651_p6 }
 0x36f   : > { %1539 = dma.done.wait (!%p1403_p2), %s1222_s13, 128  }
 0x370   : > { %1541 = vsyncadd (!%p1403_p2), %s1222_s13, 4294967168  ;;  %p18_p3 = scmp.ge.s32.totalorder %s1634_s11, 4   ;;  %s1922_s27 = smov %s1548_s28 }
 0x371   : > { %s1923_s28 = smov %s1552_s29  ;;  %s1924_s29 = smov %s1645_s14 }
 0x372   : > { %s1925_s30 = smov %s1634_s11  ;;  %20 = sbr.rel (!%p18_p3) target bundleno = 3 (0x3), region = 91 }
 0x379   :  { %1227 = vsyncpa [#allocation3], 1 }
 0x37a   :  { %1229 = vsyncpa [#allocation3 + $0x1], 1 }

// kernel: tpu_custom_call.1
= control target key start
LH: loop header
LB: loop body
LE: loop exit
PB: predicated region body
PF: predicated region fallthrough
CT: control target
= control target key end

     0   :  { %13 = vsyncpa [#allocation3], 0  ;;  %s1911_s0 = inlined_call_operand.vmem [shape: bf16[2,8,256], index: 0, kind: input, shape index: {}]   ;;  %s1912_s1 = inlined_call_operand.vmem [shape: bf16[256,192], index: 1, kind: input, shape index: {}]   ;;  %s1913_s2 = inlined_call_operand.vmem [shape: f32[3,8,8], index: 2, kind: input, shape index: {}]   ;;  %s1914_s3 = inlined_call_operand.vmem [shape: f32[3,8,8], index: 3, kind: input, shape index: {}]   ;;  %s1915_s4 = inlined_call_operand.vmem [shape: f32[8,32], index: 4, kind: input, shape index: {}]   ;;  %s1916_s5 = inlined_call_operand.vmem [shape: f32[8,32], index: 5, kind: input, shape index: {}]   ;;  %s1917_s6 = inlined_call_operand.vmem [shape: f32[32,256], index: 6, kind: input, shape index: {}]   ;;  %s1918_s7 = inlined_call_operand.vmem [shape: f32[32,256], index: 7, kind: input, shape index: {}]   ;;  %s1919_s8 = inlined_call_operand.hbm [shape: bf16[2,8,256], index: 8, kind: output, shape index: {}]  }
   0x1   :  { %15 = vsyncpa [#allocation3 + $0x1], 0  ;;  %s1609_s27 = smov 0   ;;  %s1611_s28 = smov 0  }
   0x2   :  { %s1613_s29 = smov 0   ;;  %s1615_s30 = smov 0  }
   0x3 LB: > { %s1630_s9 = sadd.s32 4294967295, %s1556_s30   ;;  %s1268_s10 = sadd.s32 4294967294, %s1556_s30   ;;  %s1556_s30 = sphi %s1615_s30, %s1925_s30   ;;  %s1552_s29 = sphi %s1613_s29, %s1924_s29   ;;  %s1548_s28 = sphi %s1611_s28, %s1923_s28   ;;  %s1544_s27 = sphi %s1609_s27, %s1922_s27  }
   0x4   : > { %s1634_s11 = sadd.s32 1, %s1556_s30   ;;  %s201_s12 = sadd.s32 1, %s1552_s29 }
   0x5   : > { %s198_s13 = ssub.s32 %s1556_s30, %s1634_s11  ;;  %p211_p0 = scmp.ne.s32.totalorder %s1552_s29, %s1548_s28 }
   0x6   : > { %p199_p1 = scmp.eq.s32.totalorder %s198_s13, 0  ;;  %p212_p2 = scmp.eq.s32.totalorder %s1630_s9, 1 }
   0x7   : > { %p217_p3 = scmp.ne.s32.totalorder %s1548_s28, %s1544_s27  ;;  %p218_p4 = scmp.eq.s32.totalorder %s1268_s10, 1 }
   0x8   : > { %s1645_s14 = scalar_select %p199_p1, %s1552_s29, %s201_s12  }
   0x9   : > { %p1647_p5 = por %p212_p2, %p211_p0  ;;  %p1651_p6 = por %p218_p4, %p217_p3 }
   0xa   : > { %p1271_p7 = scmp.ge.s32.totalorder %s1556_s30, 1  ;;  %p265_p8 = scmp.lt.s32.totalorder %s1556_s30, 3 }
   0xc   : > { %p266_p9 = pnand %p1271_p7, %p265_p8 }
   0xd   : > { %v1444_v0 = vld [vmem:[%s1912_s1 + $0x4] ss:$8 sps:$4 sm:$0xff] (!%p266_p9)   ;;  %v1446_v1 = vld [vmem:[%s1912_s1] ss:$8 sps:$4 sm:$0xff] (!%p266_p9)   ;;  %v1447_v2 = vld [vmem:[%s1912_s1 + $0x14] ss:$8 sps:$4 sm:$0xff] (!%p266_p9)  }
   0xe   : > { %269 = sbr.rel (%p266_p9) target bundleno = 875 (0x36b), region = 52  ;;  %504 = vmatprep.subr.bf16.mxu0 (!%p266_p9), %v1444_v0  ;;  %v1449_v3 = vld [vmem:[%s1912_s1 + $0x10] ss:$8 sps:$4 sm:$0xff] (!%p266_p9)   ;;  %v1450_v4 = vld [vmem:[%s1912_s1 + $0x24] ss:$8 sps:$4 sm:$0xff] (!%p266_p9)   ;;  %p299_p10 = scmp.lt.s32.totalorder (!%p266_p9), %s1630_s9, 1 }
   0xf   : > { %505 = vmatpush1.bf16.msra.mxu0 (!%p266_p9), %v1446_v1  ;;  %v1452_v5 = vld [vmem:[%s1912_s1 + $0x20] ss:$8 sps:$4 sm:$0xff] (!%p266_p9)   ;;  %v1453_v6 = vld [vmem:[%s1912_s1 + $0x34] ss:$8 sps:$4 sm:$0xff] (!%p266_p9)   ;;  %v1455_v7 = vld [vmem:[%s1912_s1 + $0x30] ss:$8 sps:$4 sm:$0xff] (!%p266_p9)  }
  0x10   : > { %506 = vmatprep.subr.bf16.mxu0 (!%p266_p9), %v1447_v2  ;;  %v1456_v8 = vld [vmem:[%s1912_s1 + $0x44] ss:$8 sps:$4 sm:$0xff] (!%p266_p9)   ;;  %v1458_v9 = vld [vmem:[%s1912_s1 + $0x40] ss:$8 sps:$4 sm:$0xff] (!%p266_p9)   ;;  %v1459_v10 = vld [vmem:[%s1912_s1 + $0x54] ss:$8 sps:$4 sm:$0xff] (!%p266_p9)  }
  0x11   : > { %v1461_v11 = vld [vmem:[%s1912_s1 + $0x50] ss:$8 sps:$4 sm:$0xff] (!%p266_p9)   ;;  %v1462_v12 = vld [vmem:[%s1912_s1 + $0x64] ss:$8 sps:$4 sm:$0xff] (!%p266_p9)   ;;  %v1464_v15 = vld [vmem:[%s1912_s1 + $0x60] ss:$8 sps:$4 sm:$0xff] (!%p266_p9)  }
  0x12   : > { %v1465_v16 = vld [vmem:[%s1912_s1 + $0x74] ss:$8 sps:$4 sm:$0xff] (!%p266_p9)   ;;  %v1467_v17 = vld [vmem:[%s1912_s1 + $0x70] ss:$8 sps:$4 sm:$0xff] (!%p266_p9)   ;;  %v1468_v18 = vld [vmem:[%s1912_s1 + $0x84] ss:$8 sps:$4 sm:$0xff] (!%p266_p9)  }
  0x13   : > { %507 = vmatpush1.bf16.msra.mxu0 (!%p266_p9), %v1449_v3  ;;  %v1470_v19 = vld [vmem:[%s1912_s1 + $0x80] ss:$8 sps:$4 sm:$0xff] (!%p266_p9)   ;;  %v1471_v20 = vld [vmem:[%s1912_s1 + $0x94] ss:$8 sps:$4 sm:$0xff] (!%p266_p9)   ;;  %v1473_v21 = vld [vmem:[%s1912_s1 + $0x90] ss:$8 sps:$4 sm:$0xff] (!%p266_p9)  }
  0x14   : > { %508 = vmatprep.subr.bf16.mxu0 (!%p266_p9), %v1450_v4  ;;  %v1474_v22 = vld [vmem:[%s1912_s1 + $0xa4] ss:$8 sps:$4 sm:$0xff] (!%p266_p9)   ;;  %v1476_v23 = vld [vmem:[%s1912_s1 + $0xa0] ss:$8 sps:$4 sm:$0xff] (!%p266_p9)   ;;  %v1477_v24 = vld [vmem:[%s1912_s1 + $0xb4] ss:$8 sps:$4 sm:$0xff] (!%p266_p9)  }
  0x15   : > { %s300_s20 = scalar_select %p299_p10, %s1630_s9, 1  ;;  %v1479_v25 = vld [vmem:[%s1912_s1 + $0xb0] ss:$8 sps:$4 sm:$0xff]   ;;  %v1480_v26 = vld [vmem:[%s1912_s1 + $0xc4] ss:$8 sps:$4 sm:$0xff]   ;;  %v1558_v35 = vmov 0.0  }
  0x16   : > { %v1482_v27 = vld [vmem:[%s1912_s1 + $0xc0] ss:$8 sps:$4 sm:$0xff]   ;;  %v1483_v28 = vld [vmem:[%s1912_s1 + $0xd4] ss:$8 sps:$4 sm:$0xff]   ;;  %v1485_v29 = vld [vmem:[%s1912_s1 + $0xd0] ss:$8 sps:$4 sm:$0xff]   ;;  %1342 = vmatprep.subr.mxu1 %v1558_v35 }
  0x17   : > { %509 = vmatpush1.bf16.msra.mxu0 %v1452_v5  ;;  %s1327_s25 = sshll.u32 %s300_s20, 3  ;;  %v1486_v30 = vld [vmem:[%s1912_s1 + $0xe4] ss:$8 sps:$4 sm:$0xff]   ;;  %v1488_v31 = vld [vmem:[%s1912_s1 + $0xe0] ss:$8 sps:$4 sm:$0xff]   ;;  %vm1559_vm0 = vmmov 0  }
  0x18   : > { %510 = vmatprep.subr.bf16.mxu0 %v1453_v6  ;;  %s303_s17 = scalar_lea.vmem %s1911_s0, %s1327_s25  ;;  %v1489_v32 = vld [vmem:[%s1912_s1 + $0xf4] ss:$8 sps:$4 sm:$0xff]   ;;  %v1491_v33 = vld [vmem:[%s1912_s1 + $0xf0] ss:$8 sps:$4 sm:$0xff]   ;;  %1344 = vmatprep.mubr.msk.f32.mxu1 %vm1559_vm0, %v1558_v35  ;;  %v547_v37 = vld [vmem:[%s1913_s2] sm:$0xff]  ;;  %vm548_vm1 = vcmask 64512  }
  0x19   : > { %v1701_v13 = vld [vmem:[%s303_s17] sm:$0xff]  ;;  %s1560_s23 = smov 64   ;;  %s1561_s24 = smov 32   ;;  %v1311_v43 = vld [vmem:[%s1913_s2 + $0x8] sm:$0xff]  ;;  %v1027_v48 = vld [vmem:[%s1918_s7 + $0x18] sm:$0xff]  ;;  %vm1032_vm2 = vcmask 261120  }
  0x1a   : > { %v1276_v14 = vcombine.high %v1701_v13, %v1701_v13  ;;  %v1275_v34 = vcombine.low %v1701_v13, %v1701_v13  ;;  %s1562_s25 = smov 96   ;;  %v623_v41 = vld [vmem:[%s1914_s3] sm:$0xff]  ;;  %v1313_v45 = vld [vmem:[%s1914_s3 + $0x8] sm:$0xff]  ;;  %v1315_v49 = vld [vmem:[%s1913_s2 + $0x10] sm:$0xff]  ;;  %s296_s21 = sand.u32 1, %s1548_s28  }
  0x1b   : > { %511 = vmatpush1.bf16.msra.mxu0 %v1455_v7  ;;  %v1025_v47 = vld [vmem:[%s1918_s7 + $0x8] sm:$0xff]  ;;  %v1317_v52 = vld [vmem:[%s1914_s3 + $0x10] sm:$0xff]  ;;  %v1024_v53 = vld [vmem:[%s1918_s7] sm:$0xff]  ;;  %s1272_s22 = sshll.u32 %s296_s21, 3  ;;  %s1329_s20 = sshll.u32 %s1630_s9, 7 }
  0x1c   : > { %512 = vmatprep.subr.bf16.mxu0 %v1456_v8  ;;  %536 = vmatprep.mubr.bf16.mxu0 %v1276_v14  ;;  %v1372_v50 = vpack.c.bf16 %v1027_v48, %v1025_v47  ;;  %v1026_v54 = vld [vmem:[%s1918_s7 + $0x10] sm:$0xff]  ;;  %v1029_v56 = vld [vmem:[%s1918_s7 + $0x28] sm:$0xff]  ;;  %v1031_v57 = vld [vmem:[%s1918_s7 + $0x38] sm:$0xff]  ;;  %s1869_s10 = scalar_lea.hbm %s1919_s8, %s1329_s20  ;;  %s1195_s12 = scalar_lea.sflag [#allocation3], %s296_s21 }
  0x1d   : > { %v1374_v55 = vpack.c.bf16 %v1026_v54, %v1024_v53  ;;  %v1376_v58 = vpack.c.bf16 %v1031_v57, %v1029_v56  ;;  %v1028_v59 = vld [vmem:[%s1918_s7 + $0x20] sm:$0xff]  ;;  %v1030_v60 = vld [vmem:[%s1918_s7 + $0x30] sm:$0xff]  ;;  %v1017_v62 = vld [vmem:[%s1917_s6 + $0x8] sm:$0xff]  ;;  %s1563_s9 = smov [#allocation2]  }
  0x1e   : > { %v1378_v61 = vpack.c.bf16 %v1030_v60, %v1028_v59  ;;  %v1019_v63 = vld [vmem:[%s1917_s6 + $0x18] sm:$0xff]  ;;  %v1016_v3 = vld [vmem:[%s1917_s6] sm:$0xff]  ;;  %v1018_v4 = vld [vmem:[%s1917_s6 + $0x10] sm:$0xff]  ;;  %s1498_s17 = sshll.u32 %s1563_s9, 4  ;;  %s1499_s17 = int_to_ptr.vmem [resolvable:$false] %s1498_s17 }
  0x1f   : > { %513 = vmatpush1.bf16.msra.mxu0 %v1458_v9  ;;  %v1380_v0 = vpack.c.bf16 %v1019_v63, %v1017_v62  ;;  %v546_v5 = vld [vmem:[%s1916_s5] sm:$0xff]  ;;  %v1021_v6 = vld [vmem:[%s1917_s6 + $0x28] sm:$0xff]  ;;  %v1023_v7 = vld [vmem:[%s1917_s6 + $0x38] sm:$0xff]  ;;  %v1382_v9 = vpack.c.bf16 %v1018_v4, %v1016_v3  ;;  %s1500_s18 = scalar_lea.vmem %s1499_s17, 256 }
  0x20   : > { %514 = vmatprep.subr.bf16.mxu0 %v1459_v10  ;;  %v1020_v14 = vld [vmem:[%s1917_s6 + $0x20] sm:$0xff] }
  0x23   : > { %515 = vmatpush1.bf16.msra.mxu0 %v1461_v11 }
  0x24   : > { %516 = vmatprep.subr.bf16.mxu0 %v1462_v12  ;;  %v1384_v12 = vpack.c.bf16 %v1023_v7, %v1021_v6 }
  0x27   : > { %517 = vmatpush1.bf16.msra.mxu0 %v1464_v15  ;;  %v1022_v15 = vld [vmem:[%s1917_s6 + $0x30] sm:$0xff] }
  0x28   : > { %518 = vmatprep.subr.bf16.mxu0 %v1465_v16  ;;  %v1386_v16 = vpack.c.bf16 %v1022_v15, %v1020_v14 }
  0x2b   : > { %519 = vmatpush1.bf16.msra.mxu0 %v1467_v17  ;;  %v545_v17 = vld [vmem:[%s1915_s4] sm:$0xff] }
  0x2c   : > { %520 = vmatprep.subr.bf16.mxu0 %v1468_v18 }
  0x2f   : > { %521 = vmatpush1.bf16.msra.mxu0 %v1470_v19  ;;  %v1181_v19 = vunpack.c.l.bf16 %v1701_v13 }
  0x30   : > { %522 = vmatprep.subr.bf16.mxu0 %v1471_v20  ;;  %v1182_v20 = vunpack.c.h.bf16 %v1701_v13 }
  0x33   : > { %523 = vmatpush1.bf16.msra.mxu0 %v1473_v21 }
  0x34   : > { %524 = vmatprep.subr.bf16.mxu0 %v1474_v22 }
  0x37   : > { %525 = vmatpush1.bf16.msra.mxu0 %v1476_v23 }
  0x38   : > { %526 = vmatprep.subr.bf16.mxu0 %v1477_v24 }
  0x3b   : > { %527 = vmatpush1.bf16.msra.mxu0 %v1479_v25 }
  0x3c   : > { %528 = vmatprep.subr.bf16.mxu0 %v1480_v26 }
  0x3f   : > { %529 = vmatpush1.bf16.msra.mxu0 %v1482_v27 }
  0x40   : > { %530 = vmatprep.subr.bf16.mxu0 %v1483_v28 }
  0x43   : > { %531 = vmatpush1.bf16.msra.mxu0 %v1485_v29 }
  0x44   : > { %532 = vmatprep.subr.bf16.mxu0 %v1486_v30 }
  0x47   : > { %533 = vmatpush1.bf16.msra.mxu0 %v1488_v31 }
  0x48   : > { %534 = vmatprep.subr.bf16.mxu0 %v1489_v32 }
  0x4b   : > { %535 = vmatpush1.bf16.msra.mxu0 %v1491_v33 }
  0x4e   : > { %537 = vmatmul.mubr.bf16.vlgmr.msra.gmra.mrb[0].mxu0 %v1275_v34 }
 0x121   : > { %v538_v36 = vpop.f32.mrb[0].mxu0 }
 0x122   : > { %859 = vrot.lane.b32.xlu1 %v538_v36, %s1560_s23  ;;  %625 = vrot.lane.b32.xlu0 %v538_v36, %s1561_s24  ;;  %v540_v38 = vpop.f32.mrb[1].mxu0  ;;  %s298_s23 = scalar_lea.vmem [#allocation2], %s1272_s22 }
 0x123   : > { %1343 = vmatpush3.msra.mxu1 %v538_v36  ;;  %v542_v39 = vpop.f32.mrb[2].mxu0  ;;  %s1209_s24 = sshll.u32 %s298_s23, 4  ;;  %s1871_s24 = int_to_ptr.vmem [resolvable:$true] %s1209_s24 }
 0x124   : > { %v543_v40 = vpop.f32.mrb[3].mxu0  ;;  %1345 = vmatmul.mubr.msk.f32.vlgmr.msra.gmra.mrb[0].mxu1 %vm548_vm1, %v547_v37  ;;  %1347 = vmatprep.subr.mxu1 %v1558_v35  ;;  %s1494_s13 = scalar_lea.vmem %s1871_s24, 128  ;;  %p1501_p0 = scmp.lt.s32.totalorder %s1871_s24, %s1499_s17 }
 0x125   : > { %1349 = vmatprep.mubr.msk.f32.mxu1 %vm1559_vm0, %v1558_v35  ;;  %p1495_p11 = scmp.ne.s32.totalorder %s1871_s24, %s1494_s13  ;;  %p1502_p1 = scmp.lt.s32.totalorder %s1500_s18, %s1494_s13 }
 0x126   : > { %704 = vrot.lane.b32.xlu0 %v538_v36, %s1562_s25  ;;  %939 = vrot.lane.b32.xlu1 %v540_v38, %s1562_s25 }
 0x127   : > { %p1496_p12 = pnand %p1495_p11, %p1647_p5  ;;  %p1503_p2 = por %p1502_p1, %p1501_p0 }
 0x129   : > { %p1497_p13 = pneg %p1496_p12 }
 0x12b   : > { %p1504_p3 = pnand %p1503_p2, %p1497_p13 }
 0x194   : > { %v626_v42 = vpop.permute.xlu0 %625  ;;  %v860_v46 = vpop.permute.xlu1 %859 }
 0x195   : > { %1348 = vmatpush3.msra.mxu1 %v626_v42 }
 0x196   : > { %1350 = vmatmul.mubr.msk.f32.vlgmr.msra.gmra.mrb[2].mxu1 %vm548_vm1, %v623_v41  ;;  %1352 = vmatprep.subr.mxu1 %v1558_v35 }
 0x197   : > { %1354 = vmatprep.mubr.msk.f32.mxu1 %vm1559_vm0, %v1558_v35 }
 0x198   : > { %v705_v44 = vpop.permute.xlu0 %704  ;;  %v940_v51 = vpop.permute.xlu1 %939 }
 0x199   : > { %1353 = vmatpush3.msra.mxu1 %v705_v44 }
 0x19a   : > { %1355 = vmatmul.mubr.msk.f32.vlgmr.msra.gmra.mrb[0].mxu1 %vm548_vm1, %v1311_v43  ;;  %1357 = vmatprep.subr.mxu1 %v1558_v35 }
 0x19b   : > { %1358 = vmatpush3.msra.mxu1 %v540_v38  ;;  %1359 = vmatprep.mubr.msk.f32.mxu1 %vm1559_vm0, %v1558_v35 }
 0x19c   : > { %1362 = vmatprep.subr.mxu1 %v1558_v35 }
 0x19e   : > { %1360 = vmatmul.mubr.msk.f32.vlgmr.msra.gmra.mrb[2].mxu1 %vm548_vm1, %v1313_v45 }
 0x19f   : > { %1363 = vmatpush3.msra.mxu1 %v860_v46  ;;  %1364 = vmatprep.mubr.msk.f32.mxu1 %vm1559_vm0, %v1558_v35 }
 0x1a0   : > { %1367 = vmatprep.subr.mxu1 %v1558_v35 }
 0x1a2   : > { %1365 = vmatmul.mubr.msk.f32.vlgmr.msra.gmra.mrb[0].mxu1 %vm548_vm1, %v1315_v49 }
 0x1a3   : > { %1368 = vmatpush3.msra.mxu1 %v940_v51  ;;  %1369 = vmatprep.mubr.msk.f32.mxu1 %vm1559_vm0, %v1558_v35 }
 0x1a4   : > { %1373 = vmatprep.subr.bf16.mxu1 %v1372_v50 }
 0x1a6   : > { %1370 = vmatmul.mubr.msk.f32.vlgmr.msra.gmra.mrb[2].mxu1 %vm548_vm1, %v1317_v52 }
 0x1a7   : > { %1100 = vmatprep.mubr.f32.mxu1 %v1558_v35  ;;  %1375 = vmatpush1.bf16.msra.mxu1 %v1374_v55 }
 0x1a8   : > { %1377 = vmatprep.subr.bf16.mxu1 %v1376_v58 }
 0x1ab   : > { %1379 = vmatpush1.bf16.msra.mxu1 %v1378_v61 }
 0x1ac   : > { %1381 = vmatprep.subr.bf16.mxu1 %v1380_v0 }
 0x275   : > { %v931_v1 = vpop.f32.mrb[0].mxu1 }
 0x276   : > { %v1366_v2 = vpop.f32.mrb[1].mxu1  ;;  %v1388_v18 = vadd.f32 %v931_v1, %v545_v17 }
 0x279   : > { %v1011_v8 = vpop.f32.mrb[2].mxu1 }
 0x27a   : > { %v1389_v10 = vadd.f32 %v1011_v8, %v546_v5  ;;  %v1371_v11 = vpop.f32.mrb[3].mxu1 }
 0x27c   : > { %1319 = vmatmul.mubr.msk.f32.vlgmr.msra.gmra.mrb[4].mxu1 %vm1032_vm2, %v1389_v10 }
 0x27d   : > { %1383 = vmatpush1.bf16.msra.mxu1 %v1382_v9  ;;  %1174 = vmatprep.mubr.f32.mxu1 %v1558_v35 }
 0x27e   : > { %1385 = vmatprep.subr.bf16.mxu1 %v1384_v12 }
 0x281   : > { %1387 = vmatpush1.bf16.msra.mxu1 %v1386_v16 }
 0x284   : > { %1320 = vmatmul.mubr.msk.f32.vlgmr.msra.gmra.mrb[4].mxu1 %vm1032_vm2, %v1388_v18 }
 0x357   : > { %v1176_v21 = vpop.f32.mrb[4].mxu1 }
 0x358   : > { %v1183_v22 = vmul.f32 %v1181_v19, %v1176_v21  ;;  %v1178_v23 = vpop.f32.mrb[5].mxu1 }
 0x359   : > { %v1184_v24 = vmul.f32 %v1182_v20, %v1178_v23 }
 0x35b   : > { %v1328_v25 = vpack.c.bf16 %v1184_v24, %v1183_v22 }
 0x35d   : > { %1193 = vst [vmem:[%s298_s23] sm:$0xff] %v1328_v25 }
 0x35e   : > { %1507 = shalt.err (!%p1504_p3)
}
 0x35f   : > { %s1508_s19 = scalar_lea.hbm %s1869_s10, 128  ;;  %s1512_s20 = scalar_lea.hbm %s1919_s8, 256 }
 0x360   : > { %p1509_p4 = scmp.ne.s32.totalorder %s1869_s10, %s1508_s19  ;;  %p1513_p9 = scmp.lt.u32.totalorder %s1869_s10, %s1919_s8 }
 0x361   : > { %p1514_p10 = scmp.lt.u32.totalorder %s1512_s20, %s1508_s19  ;;  %p1516_p12 = scmp.lt.u32.totalorder %s1508_s19, %s1869_s10 }
 0x362   : > { %p1510_p7 = pnand %p1509_p4, %p1647_p5 }
 0x363   : > { %p1515_p11 = por %p1514_p10, %p1513_p9 }
 0x364   : > { %p1511_p8 = pneg %p1510_p7 }
 0x365   : > { %p1517_p13 = por %p1516_p12, %p1515_p11 }
 0x367   : > { %p1518_p0 = pnand %p1517_p13, %p1511_p8 }
 0x369   : > { %1521 = shalt.err (!%p1518_p0)
}
 0x36a   : > { %1400 = dma.vmem_to_hbm [thread:$0]  (%p1647_p5), %s1871_s24, 128, %s1869_s10, %s1195_s12  }
 0x36b PF: > { %p1406_p1 = scmp.ge.s32.totalorder %s1556_s30, 2  ;;  %s1221_s26 = sand.u32 1, %s1544_s27  }
 0x36c   : > { %s1222_s13 = scalar_lea.sflag [#allocation3], %s1221_s26 }
 0x36d   : > { %p1403_p2 = pnand %p1406_p1, %p1651_p6 }
 0x36f   : > { %1539 = dma.done.wait (!%p1403_p2), %s1222_s13, 128  }
 0x370   : > { %1541 = vsyncadd (!%p1403_p2), %s1222_s13, 4294967168  ;;  %p18_p3 = scmp.ge.s32.totalorder %s1634_s11, 4   ;;  %s1922_s27 = smov %s1548_s28 }
 0x371   : > { %s1923_s28 = smov %s1552_s29  ;;  %s1924_s29 = smov %s1645_s14 }
 0x372   : > { %s1925_s30 = smov %s1634_s11  ;;  %20 = sbr.rel (!%p18_p3) target bundleno = 3 (0x3), region = 91 }
 0x379   :  { %1227 = vsyncpa [#allocation3], 1 }
 0x37a   :  { %1229 = vsyncpa [#allocation3 + $0x1], 1 }

</bundles_post_ra>
